<compile_context>
chip_gen: v5e
topology: v5e:2x2
jax: 0.10.0
libtpu: 0.0.40
codegen_flags: <defaults>
</compile_context>

<pallas_src>
import math
import numpy as np
import jax
import jax.numpy as jnp
from jax.experimental import pallas as pl
from jax.experimental.pallas import tpu as pltpu


def _round_up(n, m):
    return ((n + m - 1) // m) * m


def _make_kernel(*, c_out, c_in, k_size, phase_stride, n_pool, q_max, l_tile):
    """Fused conv (polyphase, stride-1 inside) + bias + PReLU [+ AvgPool] on one tile."""

    def kernel(x_ref, w_ref, b_ref, a_ref, o_ref):
        # x_ref: (1, 1, S*C_in, L_TILE + H)  phase-split windowed input tile
        #        row r*C_in + ci holds x_pad[ci, (t0 + l) * S + r]
        # w_ref: (C_out, K*C_in)             column k*C_in + ci = w[co, ci, k]
        # b_ref: (C_out, 1)                  conv bias (column, lane-broadcast)
        # a_ref: (1, 1) in SMEM              PReLU slope (shared, nn.PReLU() default)
        # o_ref: (1, C_out, L_TILE)          lane-dense NCW output tile
        xs = x_ref[0, 0]                               # (S*C_in, L_TILE + H)
        # Hoist the lane-shifted halo views out of the tap loops (q_max shifts total).
        xq = [xs[:, q:q + l_tile] for q in range(q_max)]
        wv = w_ref[...]                                # (C_out, K*C_in)
        alpha = a_ref[0, 0]
        bias = jnp.broadcast_to(b_ref[...], (c_out, l_tile))

        acts = []
        for r in range(n_pool):                        # pooling phases (1 if no pooling)
            acc = bias                                 # bias folded into accumulator init
            for k in range(k_size):                    # static taps, fully unrolled
                q, r2 = divmod(r + k, phase_stride)    # tap offset within phase / phase idx
                for ci in range(c_in):
                    col = k * c_in + ci
                    row = r2 * c_in + ci
                    # (C_out, 1) * (1, L_TILE) broadcast FMA on the VPU; time stays on lanes.
                    acc = acc + wv[:, col:col + 1] * xq[q][row:row + 1, :]
            acts.append(jnp.where(acc > 0, acc, alpha * acc))   # PReLU per pooling phase

        out = acts[0]
        for a in acts[1:]:
            out = out + a
        if n_pool > 1:
            out = out * (1.0 / n_pool)                 # AvgPool1d(kernel_size=stride)
        o_ref[0] = out.astype(o_ref.dtype)

    return kernel


def downsample_layer(x, weight_v, weight_g, bias, alpha, *, stride=1, causal=False,
                     pooling=False, use_weight_norm=True, tile_l=512):
    """Forward of DownsampleLayer.

    x:        (B, C_in, T) float32 (NCW, like the PyTorch module input)
    weight_v: (C_out, C_in, K)  weight_norm 'v' (or the plain conv weight)
    weight_g: (C_out, 1, 1)     weight_norm 'g' (ignored if use_weight_norm=False)
    bias:     (C_out,)
    alpha:    scalar PReLU slope (nn.PReLU() default: one shared parameter)
    Returns   (B, C_out, L_out) in NCW, matching the nn.Module output layout.
    """
    B, C_in, T = x.shape
    C_out, _, K = weight_v.shape

    # weight_norm forward: w = g * v / ||v||  (norm over (in, k) per output channel)
    if use_weight_norm:
        norm = jnp.sqrt(jnp.sum(weight_v * weight_v, axis=(1, 2), keepdims=True))
        w = weight_g * weight_v / norm
    else:
        w = weight_v

    S = max(int(stride), 1)                    # phase-split (decimation) factor
    n_pool = S if pooling else 1               # pooling phases fused in-kernel
    if causal:
        pad_l, pad_r = K - 1, 0
    else:
        pad_l = pad_r = (K - 1) // 2

    if pooling:
        # stride-1 conv, then AvgPool1d(kernel_size=stride) (floor)
        L_out = (T + pad_l + pad_r - K + 1) // S
    else:
        L_out = (T + pad_l + pad_r - K) // S + 1

    q_max = ((n_pool - 1) + (K - 1)) // S + 1  # taps per phase incl. pooling offsets
    H = q_max - 1                              # halo along the phase-time axis

    # Output-time tile (lane axis): multiple of 128, capped by tile_l.
    Lt = max(128, (min(tile_l, _round_up(L_out, 128)) // 128) * 128)
    J = -(-L_out // Lt)                        # number of time tiles
    U = J * Lt + H                             # phase-time length packaged
    Tpk = U * S                                # padded input length consumed

    # One pad + gather pass over the (pre-decimation) input:
    #   x_win[b, j, r*C_in + ci, l] = x_pad[b, ci, (j*Lt + l)*S + r]
    right = Tpk - (T + pad_l)
    xp = jnp.pad(x, ((0, 0), (0, 0), (pad_l, max(right, 0))))
    if right < 0:
        xp = xp[:, :, :Tpk]
    t_idx = ((np.arange(J)[:, None, None] * Lt + np.arange(Lt + H)[None, None, :]) * S
             + np.arange(S)[None, :, None])                       # (J, S, Lt+H)
    x_win = jnp.take(xp, jnp.asarray(t_idx.reshape(-1), dtype=jnp.int32), axis=2)
    x_win = x_win.reshape(B, C_in, J, S, Lt + H)
    x_win = jnp.transpose(x_win, (0, 2, 3, 1, 4)).reshape(B, J, S * C_in, Lt + H)

    w2 = jnp.transpose(w, (0, 2, 1)).reshape(C_out, K * C_in)     # column = k*C_in + ci
    b2 = bias.reshape(C_out, 1).astype(jnp.float32)
    a2 = jnp.reshape(alpha, (1, 1)).astype(jnp.float32)

    R = S * C_in
    kernel = _make_kernel(c_out=C_out, c_in=C_in, k_size=K, phase_stride=S,
                          n_pool=n_pool, q_max=q_max, l_tile=Lt)

    out = pl.pallas_call(
        kernel,
        out_shape=jax.ShapeDtypeStruct((B, C_out, J * Lt), x.dtype),
        grid_spec=pltpu.PrefetchScalarGridSpec(
            num_scalar_prefetch=0,
            grid=(B, J),
            in_specs=[
                pl.BlockSpec((1, 1, R, Lt + H), lambda b, j: (b, j, 0, 0)),
                pl.BlockSpec((C_out, K * C_in), lambda b, j: (0, 0)),
                pl.BlockSpec((C_out, 1), lambda b, j: (0, 0)),
                pl.BlockSpec(memory_space=pltpu.MemorySpace.SMEM),   # PReLU slope
            ],
            out_specs=pl.BlockSpec((1, C_out, Lt), lambda b, j: (b, 0, j)),
        ),
        compiler_params=pltpu.CompilerParams(
            dimension_semantics=("parallel", "parallel")),
    )(x_win, w2, b2, a2)

    return out if J * Lt == L_out else out[:, :, :L_out]


def _reference(x, weight_v, weight_g, bias, alpha, *, stride, causal, pooling,
               use_weight_norm):
    """Pure-JAX reference (elementwise f32 math only, no MXU/conv precision effects)."""
    B, C_in, T = x.shape
    C_out, _, K = weight_v.shape
    if use_weight_norm:
        norm = jnp.sqrt(jnp.sum(weight_v * weight_v, axis=(1, 2), keepdims=True))
        w = weight_g * weight_v / norm
    else:
        w = weight_v
    S = 1 if pooling else stride
    if causal:
        pad_l, pad_r = K - 1, 0
    else:
        pad_l = pad_r = (K - 1) // 2
    L_out = (T + pad_l + pad_r - K) // S + 1
    xp = jnp.pad(x, ((0, 0), (0, 0), (pad_l, pad_r)))
    y = jnp.zeros((B, C_out, L_out), jnp.float32) + bias[None, :, None]
    for k in range(K):
        xk = xp[:, :, k:k + (L_out - 1) * S + 1:S]                # (B, C_in, L_out)
        y = y + jnp.sum(w[:, :, k][None, :, :, None] * xk[:, None, :, :], axis=2)
    y = jnp.where(y > 0, y, alpha * y)
    if pooling:
        Lp = y.shape[2] // stride
        y = y[:, :, :Lp * stride].reshape(B, C_out, Lp, stride).mean(axis=-1)
    return y


if __name__ == "__main__":
    key = jax.random.PRNGKey(0)
    B, C_in, C_out, T = 2, 4, 8, 1024
    K, stride = 7, 2

    k1, k2, k3, k4 = jax.random.split(key, 4)
    x = jax.random.normal(k1, (B, C_in, T), jnp.float32)

    # deterministic synthetic parameters (shapes from DownsampleLayer.__init__)
    bound = 1.0 / math.sqrt(C_in * K)
    weight_v = jax.random.uniform(k2, (C_out, C_in, K), jnp.float32, -bound, bound)
    weight_g = jax.random.uniform(k3, (C_out, 1, 1), jnp.float32, 0.5, 1.5)
    bias = jax.random.uniform(k4, (C_out,), jnp.float32, -bound, bound)
    alpha = jnp.float32(0.25)          # nn.PReLU() default (single shared slope)
    # NOTE: a per-channel PReLU (num_parameters=C_out) would just make `alpha` a
    # (C_out, 1) VMEM column instead of an SMEM scalar.

    configs = [
        dict(stride=stride, causal=False, pooling=False),   # strided conv path
        dict(stride=stride, causal=True,  pooling=True),    # fused conv+PReLU+AvgPool path
    ]
    for cfg in configs:
        out = downsample_layer(x, weight_v, weight_g, bias, alpha,
                               use_weight_norm=True, tile_l=256, **cfg)
        out = jax.block_until_ready(out)
        ref = _reference(x, weight_v, weight_g, bias, alpha,
                         use_weight_norm=True, **cfg)
        assert out.shape == ref.shape, (cfg, out.shape, ref.shape)
        np.testing.assert_allclose(np.asarray(out), np.asarray(ref),
                                   rtol=1e-5, atol=1e-5)

    print("KERNEL_OK")
</pallas_src>

<mosaic_0001>
module attributes {stable_mosaic.version = 11 : i64} {
  func.func @kernel(%arg0: i32, %arg1: i32, %arg2: memref<1x1x8x259xf32, #tpu.memory_space<vmem>>, %arg3: memref<8x28xf32, #tpu.memory_space<vmem>>, %arg4: memref<8x1xf32, #tpu.memory_space<vmem>>, %arg5: memref<1x1xf32, #tpu.memory_space<smem>>, %arg6: memref<1x8x256xf32, #tpu.memory_space<vmem>>) attributes {dimension_semantics = [#tpu.dimension_semantics<parallel>, #tpu.dimension_semantics<parallel>], iteration_bounds = array<i64: 2, 2>, scalar_prefetch = 0 : i64, scratch_operands = 0 : i64, tpu.core_type = #tpu.core_type<tc>, window_params = [{transform_indices = @transform_0, window_bounds = array<i64: 1, 1, 8, 259>}, {pipeline_mode = #tpu.pipeline_mode<synchronous>, transform_indices = @transform_1, window_bounds = array<i64: 8, 28>}, {pipeline_mode = #tpu.pipeline_mode<synchronous>, transform_indices = @transform_2, window_bounds = array<i64: 8, 1>}, {transform_indices = @transform_3, window_bounds = array<i64: 1, 1>}, {transform_indices = @transform_4, window_bounds = array<i64: 1, 8, 256>}]} {
    %c0 = arith.constant 0 : index
    %c0_0 = arith.constant 0 : index
    %c0_1 = arith.constant 0 : index
    %c0_2 = arith.constant 0 : index
    %0 = vector.load %arg2[%c0, %c0_0, %c0_1, %c0_2] : memref<1x1x8x259xf32, #tpu.memory_space<vmem>>, vector<1x1x8x259xf32>
    %1 = vector.shape_cast %0 : vector<1x1x8x259xf32> to vector<8x259xf32>
    %2 = vector.extract_strided_slice %1 {offsets = [0, 0], sizes = [8, 256], strides = [1, 1]} : vector<8x259xf32> to vector<8x256xf32>
    %3 = vector.extract_strided_slice %1 {offsets = [0, 1], sizes = [8, 256], strides = [1, 1]} : vector<8x259xf32> to vector<8x256xf32>
    %4 = vector.extract_strided_slice %1 {offsets = [0, 2], sizes = [8, 256], strides = [1, 1]} : vector<8x259xf32> to vector<8x256xf32>
    %5 = vector.extract_strided_slice %1 {offsets = [0, 3], sizes = [8, 256], strides = [1, 1]} : vector<8x259xf32> to vector<8x256xf32>
    %c0_3 = arith.constant 0 : index
    %c0_4 = arith.constant 0 : index
    %6 = vector.load %arg3[%c0_3, %c0_4] : memref<8x28xf32, #tpu.memory_space<vmem>>, vector<8x28xf32>
    %c0_5 = arith.constant 0 : index
    %c0_6 = arith.constant 0 : index
    %7 = memref.load %arg5[%c0_5, %c0_6] : memref<1x1xf32, #tpu.memory_space<smem>>
    %c0_7 = arith.constant 0 : index
    %c0_8 = arith.constant 0 : index
    %8 = vector.load %arg4[%c0_7, %c0_8] : memref<8x1xf32, #tpu.memory_space<vmem>>, vector<8x1xf32>
    %9 = vector.shape_cast %8 : vector<8x1xf32> to vector<8x1xf32>
    %10 = vector.broadcast %9 : vector<8x1xf32> to vector<8x256xf32>
    %11 = vector.extract_strided_slice %6 {offsets = [0, 0], sizes = [8, 1], strides = [1, 1]} : vector<8x28xf32> to vector<8x1xf32>
    %12 = vector.extract_strided_slice %2 {offsets = [0, 0], sizes = [1, 256], strides = [1, 1]} : vector<8x256xf32> to vector<1x256xf32>
    %13 = vector.broadcast %11 : vector<8x1xf32> to vector<8x256xf32>
    %14 = vector.broadcast %12 : vector<1x256xf32> to vector<8x256xf32>
    %15 = arith.mulf %13, %14 : vector<8x256xf32>
    %16 = arith.addf %10, %15 : vector<8x256xf32>
    %17 = vector.extract_strided_slice %6 {offsets = [0, 1], sizes = [8, 1], strides = [1, 1]} : vector<8x28xf32> to vector<8x1xf32>
    %18 = vector.extract_strided_slice %2 {offsets = [1, 0], sizes = [1, 256], strides = [1, 1]} : vector<8x256xf32> to vector<1x256xf32>
    %19 = vector.broadcast %17 : vector<8x1xf32> to vector<8x256xf32>
    %20 = vector.broadcast %18 : vector<1x256xf32> to vector<8x256xf32>
    %21 = arith.mulf %19, %20 : vector<8x256xf32>
    %22 = arith.addf %16, %21 : vector<8x256xf32>
    %23 = vector.extract_strided_slice %6 {offsets = [0, 2], sizes = [8, 1], strides = [1, 1]} : vector<8x28xf32> to vector<8x1xf32>
    %24 = vector.extract_strided_slice %2 {offsets = [2, 0], sizes = [1, 256], strides = [1, 1]} : vector<8x256xf32> to vector<1x256xf32>
    %25 = vector.broadcast %23 : vector<8x1xf32> to vector<8x256xf32>
    %26 = vector.broadcast %24 : vector<1x256xf32> to vector<8x256xf32>
    %27 = arith.mulf %25, %26 : vector<8x256xf32>
    %28 = arith.addf %22, %27 : vector<8x256xf32>
    %29 = vector.extract_strided_slice %6 {offsets = [0, 3], sizes = [8, 1], strides = [1, 1]} : vector<8x28xf32> to vector<8x1xf32>
    %30 = vector.extract_strided_slice %2 {offsets = [3, 0], sizes = [1, 256], strides = [1, 1]} : vector<8x256xf32> to vector<1x256xf32>
    %31 = vector.broadcast %29 : vector<8x1xf32> to vector<8x256xf32>
    %32 = vector.broadcast %30 : vector<1x256xf32> to vector<8x256xf32>
    %33 = arith.mulf %31, %32 : vector<8x256xf32>
    %34 = arith.addf %28, %33 : vector<8x256xf32>
    %35 = vector.extract_strided_slice %6 {offsets = [0, 4], sizes = [8, 1], strides = [1, 1]} : vector<8x28xf32> to vector<8x1xf32>
    %36 = vector.extract_strided_slice %2 {offsets = [4, 0], sizes = [1, 256], strides = [1, 1]} : vector<8x256xf32> to vector<1x256xf32>
    %37 = vector.broadcast %35 : vector<8x1xf32> to vector<8x256xf32>
    %38 = vector.broadcast %36 : vector<1x256xf32> to vector<8x256xf32>
    %39 = arith.mulf %37, %38 : vector<8x256xf32>
    %40 = arith.addf %34, %39 : vector<8x256xf32>
    %41 = vector.extract_strided_slice %6 {offsets = [0, 5], sizes = [8, 1], strides = [1, 1]} : vector<8x28xf32> to vector<8x1xf32>
    %42 = vector.extract_strided_slice %2 {offsets = [5, 0], sizes = [1, 256], strides = [1, 1]} : vector<8x256xf32> to vector<1x256xf32>
    %43 = vector.broadcast %41 : vector<8x1xf32> to vector<8x256xf32>
    %44 = vector.broadcast %42 : vector<1x256xf32> to vector<8x256xf32>
    %45 = arith.mulf %43, %44 : vector<8x256xf32>
    %46 = arith.addf %40, %45 : vector<8x256xf32>
    %47 = vector.extract_strided_slice %6 {offsets = [0, 6], sizes = [8, 1], strides = [1, 1]} : vector<8x28xf32> to vector<8x1xf32>
    %48 = vector.extract_strided_slice %2 {offsets = [6, 0], sizes = [1, 256], strides = [1, 1]} : vector<8x256xf32> to vector<1x256xf32>
    %49 = vector.broadcast %47 : vector<8x1xf32> to vector<8x256xf32>
    %50 = vector.broadcast %48 : vector<1x256xf32> to vector<8x256xf32>
    %51 = arith.mulf %49, %50 : vector<8x256xf32>
    %52 = arith.addf %46, %51 : vector<8x256xf32>
    %53 = vector.extract_strided_slice %6 {offsets = [0, 7], sizes = [8, 1], strides = [1, 1]} : vector<8x28xf32> to vector<8x1xf32>
    %54 = vector.extract_strided_slice %2 {offsets = [7, 0], sizes = [1, 256], strides = [1, 1]} : vector<8x256xf32> to vector<1x256xf32>
    %55 = vector.broadcast %53 : vector<8x1xf32> to vector<8x256xf32>
    %56 = vector.broadcast %54 : vector<1x256xf32> to vector<8x256xf32>
    %57 = arith.mulf %55, %56 : vector<8x256xf32>
    %58 = arith.addf %52, %57 : vector<8x256xf32>
    %59 = vector.extract_strided_slice %6 {offsets = [0, 8], sizes = [8, 1], strides = [1, 1]} : vector<8x28xf32> to vector<8x1xf32>
    %60 = vector.extract_strided_slice %3 {offsets = [0, 0], sizes = [1, 256], strides = [1, 1]} : vector<8x256xf32> to vector<1x256xf32>
    %61 = vector.broadcast %59 : vector<8x1xf32> to vector<8x256xf32>
    %62 = vector.broadcast %60 : vector<1x256xf32> to vector<8x256xf32>
    %63 = arith.mulf %61, %62 : vector<8x256xf32>
    %64 = arith.addf %58, %63 : vector<8x256xf32>
    %65 = vector.extract_strided_slice %6 {offsets = [0, 9], sizes = [8, 1], strides = [1, 1]} : vector<8x28xf32> to vector<8x1xf32>
    %66 = vector.extract_strided_slice %3 {offsets = [1, 0], sizes = [1, 256], strides = [1, 1]} : vector<8x256xf32> to vector<1x256xf32>
    %67 = vector.broadcast %65 : vector<8x1xf32> to vector<8x256xf32>
    %68 = vector.broadcast %66 : vector<1x256xf32> to vector<8x256xf32>
    %69 = arith.mulf %67, %68 : vector<8x256xf32>
    %70 = arith.addf %64, %69 : vector<8x256xf32>
    %71 = vector.extract_strided_slice %6 {offsets = [0, 10], sizes = [8, 1], strides = [1, 1]} : vector<8x28xf32> to vector<8x1xf32>
    %72 = vector.extract_strided_slice %3 {offsets = [2, 0], sizes = [1, 256], strides = [1, 1]} : vector<8x256xf32> to vector<1x256xf32>
    %73 = vector.broadcast %71 : vector<8x1xf32> to vector<8x256xf32>
    %74 = vector.broadcast %72 : vector<1x256xf32> to vector<8x256xf32>
    %75 = arith.mulf %73, %74 : vector<8x256xf32>
    %76 = arith.addf %70, %75 : vector<8x256xf32>
    %77 = vector.extract_strided_slice %6 {offsets = [0, 11], sizes = [8, 1], strides = [1, 1]} : vector<8x28xf32> to vector<8x1xf32>
    %78 = vector.extract_strided_slice %3 {offsets = [3, 0], sizes = [1, 256], strides = [1, 1]} : vector<8x256xf32> to vector<1x256xf32>
    %79 = vector.broadcast %77 : vector<8x1xf32> to vector<8x256xf32>
    %80 = vector.broadcast %78 : vector<1x256xf32> to vector<8x256xf32>
    %81 = arith.mulf %79, %80 : vector<8x256xf32>
    %82 = arith.addf %76, %81 : vector<8x256xf32>
    %83 = vector.extract_strided_slice %6 {offsets = [0, 12], sizes = [8, 1], strides = [1, 1]} : vector<8x28xf32> to vector<8x1xf32>
    %84 = vector.extract_strided_slice %3 {offsets = [4, 0], sizes = [1, 256], strides = [1, 1]} : vector<8x256xf32> to vector<1x256xf32>
    %85 = vector.broadcast %83 : vector<8x1xf32> to vector<8x256xf32>
    %86 = vector.broadcast %84 : vector<1x256xf32> to vector<8x256xf32>
    %87 = arith.mulf %85, %86 : vector<8x256xf32>
    %88 = arith.addf %82, %87 : vector<8x256xf32>
    %89 = vector.extract_strided_slice %6 {offsets = [0, 13], sizes = [8, 1], strides = [1, 1]} : vector<8x28xf32> to vector<8x1xf32>
    %90 = vector.extract_strided_slice %3 {offsets = [5, 0], sizes = [1, 256], strides = [1, 1]} : vector<8x256xf32> to vector<1x256xf32>
    %91 = vector.broadcast %89 : vector<8x1xf32> to vector<8x256xf32>
    %92 = vector.broadcast %90 : vector<1x256xf32> to vector<8x256xf32>
    %93 = arith.mulf %91, %92 : vector<8x256xf32>
    %94 = arith.addf %88, %93 : vector<8x256xf32>
    %95 = vector.extract_strided_slice %6 {offsets = [0, 14], sizes = [8, 1], strides = [1, 1]} : vector<8x28xf32> to vector<8x1xf32>
    %96 = vector.extract_strided_slice %3 {offsets = [6, 0], sizes = [1, 256], strides = [1, 1]} : vector<8x256xf32> to vector<1x256xf32>
    %97 = vector.broadcast %95 : vector<8x1xf32> to vector<8x256xf32>
    %98 = vector.broadcast %96 : vector<1x256xf32> to vector<8x256xf32>
    %99 = arith.mulf %97, %98 : vector<8x256xf32>
    %100 = arith.addf %94, %99 : vector<8x256xf32>
    %101 = vector.extract_strided_slice %6 {offsets = [0, 15], sizes = [8, 1], strides = [1, 1]} : vector<8x28xf32> to vector<8x1xf32>
    %102 = vector.extract_strided_slice %3 {offsets = [7, 0], sizes = [1, 256], strides = [1, 1]} : vector<8x256xf32> to vector<1x256xf32>
    %103 = vector.broadcast %101 : vector<8x1xf32> to vector<8x256xf32>
    %104 = vector.broadcast %102 : vector<1x256xf32> to vector<8x256xf32>
    %105 = arith.mulf %103, %104 : vector<8x256xf32>
    %106 = arith.addf %100, %105 : vector<8x256xf32>
    %107 = vector.extract_strided_slice %6 {offsets = [0, 16], sizes = [8, 1], strides = [1, 1]} : vector<8x28xf32> to vector<8x1xf32>
    %108 = vector.extract_strided_slice %4 {offsets = [0, 0], sizes = [1, 256], strides = [1, 1]} : vector<8x256xf32> to vector<1x256xf32>
    %109 = vector.broadcast %107 : vector<8x1xf32> to vector<8x256xf32>
    %110 = vector.broadcast %108 : vector<1x256xf32> to vector<8x256xf32>
    %111 = arith.mulf %109, %110 : vector<8x256xf32>
    %112 = arith.addf %106, %111 : vector<8x256xf32>
    %113 = vector.extract_strided_slice %6 {offsets = [0, 17], sizes = [8, 1], strides = [1, 1]} : vector<8x28xf32> to vector<8x1xf32>
    %114 = vector.extract_strided_slice %4 {offsets = [1, 0], sizes = [1, 256], strides = [1, 1]} : vector<8x256xf32> to vector<1x256xf32>
    %115 = vector.broadcast %113 : vector<8x1xf32> to vector<8x256xf32>
    %116 = vector.broadcast %114 : vector<1x256xf32> to vector<8x256xf32>
    %117 = arith.mulf %115, %116 : vector<8x256xf32>
    %118 = arith.addf %112, %117 : vector<8x256xf32>
    %119 = vector.extract_strided_slice %6 {offsets = [0, 18], sizes = [8, 1], strides = [1, 1]} : vector<8x28xf32> to vector<8x1xf32>
    %120 = vector.extract_strided_slice %4 {offsets = [2, 0], sizes = [1, 256], strides = [1, 1]} : vector<8x256xf32> to vector<1x256xf32>
    %121 = vector.broadcast %119 : vector<8x1xf32> to vector<8x256xf32>
    %122 = vector.broadcast %120 : vector<1x256xf32> to vector<8x256xf32>
    %123 = arith.mulf %121, %122 : vector<8x256xf32>
    %124 = arith.addf %118, %123 : vector<8x256xf32>
    %125 = vector.extract_strided_slice %6 {offsets = [0, 19], sizes = [8, 1], strides = [1, 1]} : vector<8x28xf32> to vector<8x1xf32>
    %126 = vector.extract_strided_slice %4 {offsets = [3, 0], sizes = [1, 256], strides = [1, 1]} : vector<8x256xf32> to vector<1x256xf32>
    %127 = vector.broadcast %125 : vector<8x1xf32> to vector<8x256xf32>
    %128 = vector.broadcast %126 : vector<1x256xf32> to vector<8x256xf32>
    %129 = arith.mulf %127, %128 : vector<8x256xf32>
    %130 = arith.addf %124, %129 : vector<8x256xf32>
    %131 = vector.extract_strided_slice %6 {offsets = [0, 20], sizes = [8, 1], strides = [1, 1]} : vector<8x28xf32> to vector<8x1xf32>
    %132 = vector.extract_strided_slice %4 {offsets = [4, 0], sizes = [1, 256], strides = [1, 1]} : vector<8x256xf32> to vector<1x256xf32>
    %133 = vector.broadcast %131 : vector<8x1xf32> to vector<8x256xf32>
    %134 = vector.broadcast %132 : vector<1x256xf32> to vector<8x256xf32>
    %135 = arith.mulf %133, %134 : vector<8x256xf32>
    %136 = arith.addf %130, %135 : vector<8x256xf32>
    %137 = vector.extract_strided_slice %6 {offsets = [0, 21], sizes = [8, 1], strides = [1, 1]} : vector<8x28xf32> to vector<8x1xf32>
    %138 = vector.extract_strided_slice %4 {offsets = [5, 0], sizes = [1, 256], strides = [1, 1]} : vector<8x256xf32> to vector<1x256xf32>
    %139 = vector.broadcast %137 : vector<8x1xf32> to vector<8x256xf32>
    %140 = vector.broadcast %138 : vector<1x256xf32> to vector<8x256xf32>
    %141 = arith.mulf %139, %140 : vector<8x256xf32>
    %142 = arith.addf %136, %141 : vector<8x256xf32>
    %143 = vector.extract_strided_slice %6 {offsets = [0, 22], sizes = [8, 1], strides = [1, 1]} : vector<8x28xf32> to vector<8x1xf32>
    %144 = vector.extract_strided_slice %4 {offsets = [6, 0], sizes = [1, 256], strides = [1, 1]} : vector<8x256xf32> to vector<1x256xf32>
    %145 = vector.broadcast %143 : vector<8x1xf32> to vector<8x256xf32>
    %146 = vector.broadcast %144 : vector<1x256xf32> to vector<8x256xf32>
    %147 = arith.mulf %145, %146 : vector<8x256xf32>
    %148 = arith.addf %142, %147 : vector<8x256xf32>
    %149 = vector.extract_strided_slice %6 {offsets = [0, 23], sizes = [8, 1], strides = [1, 1]} : vector<8x28xf32> to vector<8x1xf32>
    %150 = vector.extract_strided_slice %4 {offsets = [7, 0], sizes = [1, 256], strides = [1, 1]} : vector<8x256xf32> to vector<1x256xf32>
    %151 = vector.broadcast %149 : vector<8x1xf32> to vector<8x256xf32>
    %152 = vector.broadcast %150 : vector<1x256xf32> to vector<8x256xf32>
    %153 = arith.mulf %151, %152 : vector<8x256xf32>
    %154 = arith.addf %148, %153 : vector<8x256xf32>
    %155 = vector.extract_strided_slice %6 {offsets = [0, 24], sizes = [8, 1], strides = [1, 1]} : vector<8x28xf32> to vector<8x1xf32>
    %156 = vector.extract_strided_slice %5 {offsets = [0, 0], sizes = [1, 256], strides = [1, 1]} : vector<8x256xf32> to vector<1x256xf32>
    %157 = vector.broadcast %155 : vector<8x1xf32> to vector<8x256xf32>
    %158 = vector.broadcast %156 : vector<1x256xf32> to vector<8x256xf32>
    %159 = arith.mulf %157, %158 : vector<8x256xf32>
    %160 = arith.addf %154, %159 : vector<8x256xf32>
    %161 = vector.extract_strided_slice %6 {offsets = [0, 25], sizes = [8, 1], strides = [1, 1]} : vector<8x28xf32> to vector<8x1xf32>
    %162 = vector.extract_strided_slice %5 {offsets = [1, 0], sizes = [1, 256], strides = [1, 1]} : vector<8x256xf32> to vector<1x256xf32>
    %163 = vector.broadcast %161 : vector<8x1xf32> to vector<8x256xf32>
    %164 = vector.broadcast %162 : vector<1x256xf32> to vector<8x256xf32>
    %165 = arith.mulf %163, %164 : vector<8x256xf32>
    %166 = arith.addf %160, %165 : vector<8x256xf32>
    %167 = vector.extract_strided_slice %6 {offsets = [0, 26], sizes = [8, 1], strides = [1, 1]} : vector<8x28xf32> to vector<8x1xf32>
    %168 = vector.extract_strided_slice %5 {offsets = [2, 0], sizes = [1, 256], strides = [1, 1]} : vector<8x256xf32> to vector<1x256xf32>
    %169 = vector.broadcast %167 : vector<8x1xf32> to vector<8x256xf32>
    %170 = vector.broadcast %168 : vector<1x256xf32> to vector<8x256xf32>
    %171 = arith.mulf %169, %170 : vector<8x256xf32>
    %172 = arith.addf %166, %171 : vector<8x256xf32>
    %173 = vector.extract_strided_slice %6 {offsets = [0, 27], sizes = [8, 1], strides = [1, 1]} : vector<8x28xf32> to vector<8x1xf32>
    %174 = vector.extract_strided_slice %5 {offsets = [3, 0], sizes = [1, 256], strides = [1, 1]} : vector<8x256xf32> to vector<1x256xf32>
    %175 = vector.broadcast %173 : vector<8x1xf32> to vector<8x256xf32>
    %176 = vector.broadcast %174 : vector<1x256xf32> to vector<8x256xf32>
    %177 = arith.mulf %175, %176 : vector<8x256xf32>
    %178 = arith.addf %172, %177 : vector<8x256xf32>
    %cst = arith.constant 0.000000e+00 : f32
    %179 = vector.broadcast %cst : f32 to vector<8x256xf32>
    %180 = arith.cmpf ogt, %178, %179 : vector<8x256xf32>
    %181 = vector.broadcast %7 : f32 to vector<8x256xf32>
    %182 = arith.mulf %181, %178 : vector<8x256xf32>
    %183 = arith.select %180, %178, %182 : vector<8x256xi1>, vector<8x256xf32>
    %c0_9 = arith.constant 0 : index
    %c0_10 = arith.constant 0 : index
    %c0_11 = arith.constant 0 : index
    %184 = vector.load %arg6[%c0_9, %c0_10, %c0_11] : memref<1x8x256xf32, #tpu.memory_space<vmem>>, vector<1x8x256xf32>
    %185 = vector.shape_cast %184 : vector<1x8x256xf32> to vector<8x256xf32>
    %186 = vector.shape_cast %183 : vector<8x256xf32> to vector<1x8x256xf32>
    tpu.vector_store %arg6[%c0_9, %c0_10, %c0_11], %186 {strides = array<i32>} : memref<1x8x256xf32, #tpu.memory_space<vmem>>, vector<1x8x256xf32>,
    return
  }
  func.func @transform_0(%arg0: i32, %arg1: i32) -> (i32, i32, i32, i32) {
    %c0_i32 = arith.constant 0 : i32
    %c0_i32_0 = arith.constant 0 : i32
    %c0_i32_1 = arith.constant 0 : i32
    return %arg0, %arg1, %c0_i32, %c0_i32_0 : i32, i32, i32, i32
  }
  func.func @transform_1(%arg0: i32, %arg1: i32) -> (i32, i32) {
    %c0_i32 = arith.constant 0 : i32
    %c0_i32_0 = arith.constant 0 : i32
    %c0_i32_1 = arith.constant 0 : i32
    return %c0_i32, %c0_i32_0 : i32, i32
  }
  func.func @transform_2(%arg0: i32, %arg1: i32) -> (i32, i32) {
    %c0_i32 = arith.constant 0 : i32
    %c0_i32_0 = arith.constant 0 : i32
    %c0_i32_1 = arith.constant 0 : i32
    return %c0_i32, %c0_i32_0 : i32, i32
  }
  func.func @transform_3(%arg0: i32, %arg1: i32) -> (i32, i32) {
    %c0_i32 = arith.constant 0 : i32
    %c0_i32_0 = arith.constant 0 : i32
    %c0_i32_1 = arith.constant 0 : i32
    return %c0_i32, %c0_i32_0 : i32, i32
  }
  func.func @transform_4(%arg0: i32, %arg1: i32) -> (i32, i32, i32) {
    %c0_i32 = arith.constant 0 : i32
    %c0_i32_0 = arith.constant 0 : i32
    return %arg0, %c0_i32, %arg1 : i32, i32, i32
  }
}

</mosaic_0001>

<bundles_post_ra>
// kernel: tpu_custom_call.1
= control target key start
LH: loop header
LB: loop body
LE: loop exit
PB: predicated region body
PF: predicated region fallthrough
CT: control target
= control target key end

     0   :  { %s1662_s0 = inlined_call_operand.hbm [shape: f32[2,2,8,259], index: 0, kind: input, shape index: {}]   ;;  %s1663_s1 = inlined_call_operand.vmem [shape: f32[8,28], index: 1, kind: input, shape index: {}]   ;;  %s1664_s2 = inlined_call_operand.vmem [shape: f32[8,1], index: 2, kind: input, shape index: {}]   ;;  %s1665_s3 = inlined_call_operand.<no memory space> [shape: f32[1,1], index: 3, kind: input, shape index: {}]   ;;  %s1666_s4 = inlined_call_operand.hbm [shape: f32[2,8,512], index: 4, kind: output, shape index: {}]  }
   0x1   :  { %9 = sst [smem:[#allocation2]] %s1665_s3 }
   0x2   :  { %10 = vsyncpa [#allocation4], 0 }
   0x3   :  { %12 = vsyncpa [#allocation4 + $0x1], 0 }
   0x4   :  { %13 = vsyncpa [#allocation5], 0 }
   0x5   :  { %15 = vsyncpa [#allocation5 + $0x1], 0  ;;  %s1238_s17 = smov 0   ;;  %s1240_s18 = smov 0  }
   0x6   :  { %s1242_s19 = smov 0   ;;  %s1244_s20 = smov 0  }
   0x7   :  { %s1246_s21 = smov 0   ;;  %s1248_s22 = smov 0  }
   0x8   :  { %s1250_s23 = smov 0   ;;  %s1252_s24 = smov 0  }
   0x9 LB: > { %s894_s3 = sadd.s32 4294967295, %s1177_s24   ;;  %s895_s25 = sadd.s32 4294967294, %s1177_s24   ;;  %s1177_s24 = sphi %s1252_s24, %s21_s24   ;;  %s1173_s23 = sphi %s1250_s23, %s1681_s23   ;;  %s1169_s22 = sphi %s1248_s22, %s1680_s22   ;;  %s1165_s21 = sphi %s1246_s21, %s1679_s21   ;;  %s1161_s20 = sphi %s1244_s20, %s1678_s20   ;;  %s1157_s19 = sphi %s1242_s19, %s1677_s19   ;;  %s1153_s18 = sphi %s1240_s18, %s1676_s18   ;;  %s1149_s17 = sphi %s1238_s17, %s1675_s17  }
   0xa   : > { %s30_s26 = sadd.s32 1, %s1169_s22  ;;  %s33_s27 = sadd.s32 1, %s1173_s23 }
   0xb   : > { %p31_p0 = scmp.ge.s32.totalorder %s30_s26, 2  ;;  %s42_s28 = sadd.s32 1, %s1157_s19 }
   0xc   : > { %p49_p1 = scmp.ne.s32.totalorder %s1157_s19, %s1153_s18  ;;  %p50_p2 = scmp.eq.s32.totalorder %s1177_s24, 0 }
   0xd   : > { %s1683_s26 = smov (%p31_p0, %s30_s26), 0  ;;  %s1685_s27 = smov (!%p31_p0, %s33_s27), %s1173_s23 }
   0xe   : > { %s38_s29 = ssub.s32 %s1169_s22, %s1683_s26  ;;  %p1291_p3 = por %p50_p2, %p49_p1 }
   0xf   : > { %p35_p4 = scmp.ge.s32.totalorder %s1685_s27, 2  ;;  %p55_p5 = scmp.ne.s32.totalorder %s1153_s18, %s1149_s17 }
  0x10   : > { %p56_p6 = scmp.eq.s32.totalorder %s894_s3, 0  ;;  %p144_p7 = scmp.eq.s32.totalorder %s894_s3, 3 }
  0x11   : > { %s1687_s27 = smov (%p35_p4, %s1685_s27), 0  ;;  %p150_p10 = scmp.eq.s32.totalorder %s895_s25, 3 }
  0x12   : > { %1669 = sst [smem:[#allocation9_spill]] %s1687_s27  ;;  %p1299_p8 = por %p56_p6, %p55_p5 }
  0x13   : > { %p1303_p9 = por %p144_p7, %p49_p1  ;;  %s37_s7 = ssub.s32 %s1173_s23, %s1687_s27 }
  0x14   : > { %s39_s8 = sor.u32 %s38_s29, %s37_s7  ;;  %p1309_p12 = por %p150_p10, %p55_p5 }
  0x15   : > { %p40_p11 = scmp.eq.s32.totalorder %s39_s8, 0  ;;  %p923_p13 = scmp.lt.s32.totalorder %s1177_s24, 4 }
  0x16   : > { %s179_s10 = sand.u32 1, %s1157_s19   ;;  %s908_s13 = smul.u32 3, %s1169_s22 }
  0x17   : > { %s1316_s11 = scalar_select %p40_p11, %s1157_s19, %s42_s28  }
  0x18   : > { %s907_s12 = smul.u32 24, %s179_s10  ;;  %p1321_p0 = pnand %p923_p13, %p1291_p3 }
  0x19   : > { %s909_s15 = smul.u32 6, %s1173_s23  ;;  %p899_p1 = scmp.ge.s32.totalorder %s1177_s24, 1 }
  0x1a   : > { %s183_s16 = scalar_lea.vmem [#allocation3], %s907_s12  ;;  %p199_p2 = scmp.lt.s32.totalorder %s1177_s24, 5 }
  0x1b   : > { %s194_s3 = sshll.u32 %s183_s16, 4  ;;  %s188_s25 = sadd.s32 %s909_s15, %s908_s13  ;;  %s195_s3 = int_to_ptr.vmem [resolvable:$true] %s194_s3 }
  0x1c   : > { %s898_s29 = sshll.u32 %s188_s25, 3  ;;  %p200_p4 = pnand %p899_p1, %p199_p2 }
  0x1d   : > { %s190_s28 = scalar_lea.hbm %s1662_s0, %s898_s29  ;;  %s180_s30 = scalar_lea.sflag [#allocation4], %s179_s10 }
  0x1e   : > { %s192_s27 = sshll.u32 %s190_s28, 4  ;;  %203 = sbr.rel (%p200_p4) target bundleno = 1169 (0x491), region = 36  ;;  %s193_s27 = int_to_ptr.hbm [resolvable:$true] %s192_s27 }
  0x1f   : > { %918 = dma.hbm_to_vmem [thread:$0]  (!%p1321_p0), %s193_s27, 384, %s195_s3, %s180_s30  }
  0x20   : > { %s1334_s12 = sand.u32 (!%p200_p4), 1, %s1153_s18  }
  0x21   : > { %s910_s13 = smul.u32 (!%p200_p4), 24, %s1334_s12  ;;  %s206_s15 = scalar_lea.sflag (!%p200_p4), [#allocation4], %s1334_s12 }
  0x23   : > { %s1338_s16 = scalar_lea.vmem [#allocation3], %s910_s13 }
  0x24   : > { %1140 = dma.done.wait (%p1299_p8), %s206_s15, 384  }
  0x25   : > { %1142 = vsyncadd (%p1299_p8), %s206_s15, 4294966912  ;;  %v1179_v0 = vmov 1   ;;  %v1180_v1 = vmov 0   ;;  %v1181_v2 = vmov 3   ;;  %v1347_v3 = vld [vmem:[%s1663_s1] sm:$0xff]  ;;  %v1182_v5 = vmov 2  }
  0x26   : > { %1021 = vset.pattern.permute.xlu1 %v1179_v0  ;;  %1020 = vset.pattern.permute.xlu0 %v1180_v1  ;;  %v241_v4 = vld [vmem:[%s1664_s2] sm:$0xff]  ;;  %v1183_v6 = vmov 4   ;;  %v1184_v7 = vmov 5   ;;  %v1185_v8 = vmov 6   ;;  %v1186_v9 = vmov 7   ;;  %s1195_s5 = smov 127  }
  0x27   : > { %1023 = vset.pattern.permute.xlu2 %v1181_v2  ;;  %244 = vperm.xlu0 %1020, %v241_v4   ;;  %v1187_v10 = vmov 10   ;;  %v1188_v11 = vmov 8   ;;  %v1189_v12 = vmov 9   ;;  %v1190_v13 = vmov 12   ;;  %v236_v21 = vld [vmem:[%s1338_s16] sm:$0xff]  ;;  %v237_v22 = vld [vmem:[%s1338_s16 + $0x8] sm:$0xff] }
  0x28   : > { %259 = vperm.xlu1 %1021, %v1347_v3   ;;  %279 = vperm.xlu2 %1023, %v1347_v3   ;;  %v1191_v14 = vmov 11   ;;  %v1192_v15 = vmov 14   ;;  %v1193_v16 = vmov 13   ;;  %v1194_v17 = vmov 15   ;;  %s1198_s25 = smov 126   ;;  %s1209_s29 = smov 125  }
  0x29   : > { %v1370_v23 = vperm.slane %v236_v21, 0  ;;  %v1372_v24 = vperm.slane %v237_v22, 0  ;;  %v1374_v25 = vperm.slane %v236_v21, 1  ;;  %v1376_v26 = vperm.slane %v237_v22, 1  ;;  %s902_s7 = sshll.u32 %s1161_s20, 1  ;;  %s903_s8 = sshll.u32 %s1165_s21, 2 }
  0x2a   : > { %v1380_v32 = vperm.slane %v236_v21, 2  ;;  %v1382_v33 = vperm.slane %v237_v22, 2  ;;  %v1384_v34 = vperm.slane %v236_v21, 3  ;;  %v1386_v35 = vperm.slane %v237_v22, 3  ;;  %s1609_s28 = sld [smem:[#allocation2]]  ;;  %s800_s30 = sadd.s32 %s903_s8, %s902_s7 }
  0x2b   : > { %v1390_v40 = vperm.slane %v236_v21, 4  ;;  %v1392_v41 = vperm.slane %v237_v22, 4  ;;  %v1396_v46 = vperm.slane %v236_v21, 5  ;;  %v1398_v47 = vperm.slane %v237_v22, 5  ;;  %s900_s20 = sshll.u32 %s1334_s12, 4  ;;  %s904_s21 = sshll.u32 %s800_s30, 3 }
  0x2c   : > { %v1402_v52 = vperm.slane %v236_v21, 6  ;;  %v1404_v53 = vperm.slane %v237_v22, 6  ;;  %v1406_v54 = vperm.slane %v236_v21, 7  ;;  %v1408_v55 = vperm.slane %v237_v22, 7  ;;  %s234_s27 = scalar_lea.vmem [#allocation6], %s900_s20  ;;  %s789_s3 = scalar_lea.sflag [#allocation5], %s1334_s12 }
  0x2d   : > { %v1196_v21 = vmov 16   ;;  %vm345_vm0 = vcmask 1039360   ;;  %vm529_vm1 = vcmask 1031168   ;;  %vm706_vm2 = vcmask 1022976   ;;  %s804_s10 = sshll.u32 %s234_s27, 4  ;;  %s1099_s8 = scalar_lea.hbm %s1666_s4, 64  ;;  %s805_s10 = int_to_ptr.vmem [resolvable:$true] %s804_s10 }
  0x2f   : > { %249 = vperm.xlu0 %1020, %v1347_v3  }
  0x30   : > { %1022 = vset.pattern.permute.xlu1 %v1182_v5  ;;  %1024 = vset.pattern.permute.xlu2 %v1183_v6 }
  0x31   : > { %269 = vperm.xlu1 %1022, %v1347_v3   ;;  %289 = vperm.xlu2 %1024, %v1347_v3  }
  0x37   : > { %1025 = vset.pattern.permute.xlu0 %v1184_v7 }
  0x38   : > { %299 = vperm.xlu0 %1025, %v1347_v3  }
  0x39   : > { %1026 = vset.pattern.permute.xlu1 %v1185_v8  ;;  %1027 = vset.pattern.permute.xlu2 %v1186_v9 }
  0x3a   : > { %309 = vperm.xlu1 %1026, %v1347_v3   ;;  %319 = vperm.xlu2 %1027, %v1347_v3  }
  0x40   : > { %1030 = vset.pattern.permute.xlu0 %v1187_v10  ;;  %v1419_v10 = vld [vmem:[%s1338_s16 + $0x10] sm:$0xff]  ;;  %s802_s16 = scalar_lea.hbm %s1666_s4, %s904_s21 }
  0x41   : > { %376 = vperm.xlu0 %1030, %v1347_v3   ;;  %v1435_v22 = vperm.slane %v1419_v10, 1  ;;  %s806_s14 = sshll.u32 %s802_s16, 4  ;;  %s807_s14 = int_to_ptr.hbm [resolvable:$true] %s806_s14 }
  0x42   : > { %1028 = vset.pattern.permute.xlu1 %v1188_v11  ;;  %1029 = vset.pattern.permute.xlu2 %v1189_v12 }
  0x43   : > { %329 = vperm.xlu1 %1028, %v1347_v3   ;;  %353 = vperm.xlu2 %1029, %v1347_v3  }
  0x49   : > { %1032 = vset.pattern.permute.xlu0 %v1190_v13  ;;  %v1422_v13 = vperm.slane %v1419_v10, 0 }
  0x4a   : > { %422 = vperm.xlu0 %1032, %v1347_v3  }
  0x4b   : > { %1031 = vset.pattern.permute.xlu2 %v1191_v14 }
  0x4c   : > { %399 = vperm.xlu2 %1031, %v1347_v3  }
  0x52   : > { %1034 = vset.pattern.permute.xlu0 %v1192_v15 }
  0x53   : > { %468 = vperm.xlu0 %1034, %v1347_v3  }
  0x54   : > { %1033 = vset.pattern.permute.xlu2 %v1193_v16 }
  0x55   : > { %445 = vperm.xlu2 %1033, %v1347_v3  }
  0x5b   : > { %1036 = vset.pattern.permute.xlu0 %v1196_v21 }
  0x5d   : > { %1035 = vset.pattern.permute.xlu2 %v1194_v17 }
  0x5e   : > { %491 = vperm.xlu2 %1035, %v1347_v3  }
  0x82   : > { %v280_v18 = vpop.permute.xlu2 %279 }
  0x83   : > { %v284_v48 = vmul.f32 %v1384_v34, %v280_v18  ;;  %v285_v49 = vmul.f32 %v1386_v35, %v280_v18 }
  0x8b   : > { %v290_v27 = vpop.permute.xlu2 %289 }
  0x8c   : > { %v294_v58 = vmul.f32 %v1390_v40, %v290_v27  ;;  %v295_v59 = vmul.f32 %v1392_v41, %v290_v27 }
  0x94   : > { %v320_v61 = vpop.permute.xlu2 %319 }
  0x95   : > { %v324_v4 = vmul.f32 %v1406_v54, %v320_v61  ;;  %v325_v5 = vmul.f32 %v1408_v55, %v320_v61  ;;  %v425_v61 = vperm.slane %v1419_v10, 4 }
  0x99   : > { %v245_v19 = vpop.permute.xlu0 %244 }
  0x9a   : > { %v260_v20 = vpop.permute.xlu1 %259 }
  0x9b   : > { %v264_v36 = vmul.f32 %v1374_v25, %v260_v20  ;;  %v265_v37 = vmul.f32 %v1376_v26, %v260_v20 }
  0x9d   : > { %v354_v16 = vpop.permute.xlu2 %353 }
  0xa1   : > { %v250_v28 = vpop.permute.xlu0 %249 }
  0xa2   : > { %v254_v29 = vmul.f32 %v1370_v23, %v250_v28  ;;  %v255_v30 = vmul.f32 %v1372_v24, %v250_v28  ;;  %v357_v28 = vmul.f32 %v354_v16, %v1374_v25 }
  0xa3   : > { %v270_v31 = vpop.permute.xlu1 %269 }
  0xa4   : > { %v256_v38 = vadd.f32 %v254_v29, %v245_v19  ;;  %v257_v39 = vadd.f32 %v255_v30, %v245_v19  ;;  %v274_v44 = vmul.f32 %v1380_v32, %v270_v31  ;;  %v275_v45 = vmul.f32 %v1382_v33, %v270_v31 }
  0xa5   : > { %v358_v29 = vmul.f32 %v354_v16, %v1376_v26  ;;  %v359_v30 = vmul.f32 %v1435_v22, %v354_v16 }
  0xa6   : > { %v266_v42 = vadd.f32 %v264_v36, %v256_v38  ;;  %v267_v43 = vadd.f32 %v265_v37, %v257_v39  ;;  %v400_v27 = vpop.permute.xlu2 %399 }
  0xa7   : > { %v403_v38 = vmul.f32 %v400_v27, %v1384_v34 }
  0xa8   : > { %v276_v50 = vadd.f32 %v274_v44, %v266_v42  ;;  %v277_v51 = vadd.f32 %v275_v45, %v267_v43  ;;  %v1447_v42 = vperm.slane %v1419_v10, 2  ;;  %v1453_v43 = vperm.slane %v1419_v10, 3 }
  0xaa   : > { %v286_v56 = vadd.f32 %v284_v48, %v276_v50  ;;  %v287_v57 = vadd.f32 %v285_v49, %v277_v51  ;;  %v300_v60 = vpop.permute.xlu0 %299  ;;  %v405_v48 = vmul.f32 %v1453_v43, %v400_v27 }
  0xab   : > { %v304_v63 = vmul.f32 %v1396_v46, %v300_v60  ;;  %v305_v0 = vmul.f32 %v1398_v47, %v300_v60 }
  0xac   : > { %v310_v62 = vpop.permute.xlu1 %309  ;;  %v296_v1 = vadd.f32 %v294_v58, %v286_v56  ;;  %v297_v2 = vadd.f32 %v295_v59, %v287_v57  ;;  %v404_v57 = vmul.f32 %v400_v27, %v1386_v35  ;;  %v448_v58 = vperm.slane %v1419_v10, 5 }
  0xad   : > { %v314_v6 = vmul.f32 %v1402_v52, %v310_v62  ;;  %v315_v7 = vmul.f32 %v1404_v53, %v310_v62 }
  0xae   : > { %v306_v8 = vadd.f32 %v304_v63, %v296_v1  ;;  %v307_v9 = vadd.f32 %v305_v0, %v297_v2  ;;  %v494_v1 = vperm.slane %v1419_v10, 7 }
  0xaf   : > { %v446_v39 = vpop.permute.xlu2 %445 }
  0xb0   : > { %v316_v11 = vadd.f32 %v314_v6, %v306_v8  ;;  %v317_v12 = vadd.f32 %v315_v7, %v307_v9  ;;  %v449_v45 = vmul.f32 %v446_v39, %v1396_v46  ;;  %v451_v60 = vmul.f32 %v448_v58, %v446_v39 }
  0xb1   : > { %v450_v2 = vmul.f32 %v446_v39, %v1398_v47  ;;  %v471_v6 = vperm.slane %v1419_v10, 6 }
  0xb2   : > { %v1424_v14 = vadd.f32 %v324_v4, %v316_v11  ;;  %v1426_v15 = vadd.f32 %v325_v5, %v317_v12 }
  0xb3   : > { %v377_v31 = vpop.permute.xlu0 %376 }
  0xb4   : > { %v380_v36 = vmul.f32 %v377_v31, %v1380_v32  ;;  %v381_v37 = vmul.f32 %v377_v31, %v1382_v33  ;;  %v382_v44 = vmul.f32 %v1447_v42, %v377_v31 }
  0xb5   : > { %v330_v17 = vpop.permute.xlu1 %329 }
  0xb6   : > { %v333_v18 = vmul.f32 %v330_v17, %v1370_v23  ;;  %v334_v19 = vmul.f32 %v330_v17, %v1372_v24  ;;  %v335_v20 = vmul.f32 %v1422_v13, %v330_v17 }
  0xb8   : > { %343 = vrot.lane.b32.xlu1 %v335_v20, %s1195_s5  ;;  %341 = vrot.lane.b32.xlu0 %v334_v19, %s1195_s5  ;;  %v492_v49 = vpop.permute.xlu2 %491 }
  0xb9   : > { %339 = vrot.lane.b32.xlu2 %v333_v18, %s1195_s5  ;;  %v495_v51 = vmul.f32 %v492_v49, %v1406_v54  ;;  %v497_v4 = vmul.f32 %v494_v1, %v492_v49  ;;  %v496_v8 = vmul.f32 %v492_v49, %v1408_v55 }
  0xbc   : > { %v423_v50 = vpop.permute.xlu0 %422 }
  0xbd   : > { %v427_v56 = vmul.f32 %v423_v50, %v1392_v41  ;;  %v426_v59 = vmul.f32 %v423_v50, %v1390_v40  ;;  %v428_v63 = vmul.f32 %v425_v61, %v423_v50 }
  0xc0   : > { %365 = vrot.lane.b32.xlu1 %v358_v29, %s1195_s5  ;;  %363 = vrot.lane.b32.xlu0 %v357_v28, %s1195_s5 }
  0xc1   : > { %367 = vrot.lane.b32.xlu2 %v359_v30, %s1195_s5 }
  0xc5   : > { %v469_v62 = vpop.permute.xlu0 %468 }
  0xc6   : > { %v473_v0 = vmul.f32 %v469_v62, %v1404_v53  ;;  %v472_v5 = vmul.f32 %v469_v62, %v1402_v52  ;;  %v474_v7 = vmul.f32 %v471_v6, %v469_v62 }
  0xc8   : > { %386 = vrot.lane.b32.xlu1 %v380_v36, %s1195_s5  ;;  %409 = vrot.lane.b32.xlu0 %v403_v38, %s1195_s5 }
  0xc9   : > { %388 = vrot.lane.b32.xlu2 %v381_v37, %s1195_s5 }
  0xd0   : > { %390 = vrot.lane.b32.xlu1 %v382_v44, %s1195_s5  ;;  %455 = vrot.lane.b32.xlu0 %v449_v45, %s1195_s5  ;;  %v1197_v45 = vmov 17  }
  0xd1   : > { %413 = vrot.lane.b32.xlu2 %v405_v48, %s1195_s5 }
  0xd2   : > { %1037 = vset.pattern.permute.xlu2 %v1197_v45 }
  0xd8   : > { %411 = vrot.lane.b32.xlu1 %v404_v57, %s1195_s5  ;;  %501 = vrot.lane.b32.xlu0 %v495_v51, %s1195_s5 }
  0xd9   : > { %434 = vrot.lane.b32.xlu2 %v427_v56, %s1195_s5 }
  0xe0   : > { %432 = vrot.lane.b32.xlu1 %v426_v59, %s1195_s5  ;;  %514 = vperm.xlu0 %1036, %v1347_v3  }
  0xe1   : > { %459 = vrot.lane.b32.xlu2 %v451_v60, %s1195_s5 }
  0xe8   : > { %436 = vrot.lane.b32.xlu1 %v428_v63, %s1195_s5 }
  0xe9   : > { %480 = vrot.lane.b32.xlu2 %v473_v0, %s1195_s5 }
  0xf0   : > { %457 = vrot.lane.b32.xlu1 %v450_v2, %s1195_s5 }
  0xf1   : > { %505 = vrot.lane.b32.xlu2 %v497_v4, %s1195_s5 }
  0xf8   : > { %478 = vrot.lane.b32.xlu1 %v472_v5, %s1195_s5 }
 0x100   : > { %482 = vrot.lane.b32.xlu1 %v474_v7, %s1195_s5 }
 0x108   : > { %503 = vrot.lane.b32.xlu1 %v496_v8, %s1195_s5  ;;  %s1093_s5 = sshra.s32 %s807_s14, 4  ;;  %s1094_s5 = int_to_ptr.hbm [resolvable:$true] %s1093_s5 }
 0x109   : > { %p1100_p7 = scmp.lt.s32.totalorder %s1094_s5, %s1666_s4 }
 0x113   : > { %v340_v9 = vpop.permute.xlu2 %339 }
 0x11b   : > { %v368_v20 = vpop.permute.xlu2 %367 }
 0x123   : > { %v389_v36 = vpop.permute.xlu2 %388 }
 0x12a   : > { %v344_v11 = vpop.permute.xlu1 %343  ;;  %v342_v12 = vpop.permute.xlu0 %341 }
 0x12b   : > { %v346_v16 = vsel %vm345_vm0, %v340_v9, %v342_v12  ;;  %v347_v17 = vsel %vm345_vm0, %v342_v12, %v344_v11  ;;  %v414_v50 = vpop.permute.xlu2 %413 }
 0x12c   : > { %v350_v18 = vadd.f32 %v346_v16, %v1424_v14  ;;  %v351_v19 = vadd.f32 %v347_v17, %v1426_v15 }
 0x132   : > { %v366_v21 = vpop.permute.xlu1 %365  ;;  %v364_v27 = vpop.permute.xlu0 %363 }
 0x133   : > { %v370_v28 = vsel %vm345_vm0, %v366_v21, %v368_v20  ;;  %v369_v29 = vsel %vm345_vm0, %v364_v27, %v366_v21  ;;  %v435_v63 = vpop.permute.xlu2 %434 }
 0x134   : > { %v374_v30 = vadd.f32 %v370_v28, %v351_v19  ;;  %v373_v31 = vadd.f32 %v369_v29, %v350_v18 }
 0x13a   : > { %v387_v37 = vpop.permute.xlu1 %386  ;;  %v410_v38 = vpop.permute.xlu0 %409 }
 0x13b   : > { %v392_v39 = vsel %vm345_vm0, %v387_v37, %v389_v36  ;;  %v460_v17 = vpop.permute.xlu2 %459 }
 0x13c   : > { %v396_v44 = vadd.f32 %v392_v39, %v373_v31 }
 0x142   : > { %v391_v14 = vpop.permute.xlu1 %390  ;;  %v456_v48 = vpop.permute.xlu0 %455 }
 0x143   : > { %v393_v15 = vsel %vm345_vm0, %v389_v36, %v391_v14  ;;  %v481_v28 = vpop.permute.xlu2 %480 }
 0x144   : > { %v397_v49 = vadd.f32 %v393_v15, %v374_v30 }
 0x14a   : > { %v412_v51 = vpop.permute.xlu1 %411  ;;  %v502_v56 = vpop.permute.xlu0 %501 }
 0x14b   : > { %v415_v57 = vsel %vm345_vm0, %v410_v38, %v412_v51  ;;  %v416_v59 = vsel %vm345_vm0, %v412_v51, %v414_v50  ;;  %v506_v39 = vpop.permute.xlu2 %505 }
 0x14c   : > { %v419_v60 = vadd.f32 %v415_v57, %v396_v44  ;;  %v420_v62 = vadd.f32 %v416_v59, %v397_v49  ;;  %v1199_v49 = vmov 18  }
 0x14d   : > { %1038 = vset.pattern.permute.xlu0 %v1199_v49 }
 0x152   : > { %v433_v0 = vpop.permute.xlu1 %432  ;;  %v515_v2 = vpop.permute.xlu0 %514 }
 0x153   : > { %v438_v4 = vsel %vm345_vm0, %v433_v0, %v435_v63  ;;  %v517_v5 = vmul.f32 %v515_v2, %v1370_v23  ;;  %v518_v7 = vmul.f32 %v515_v2, %v1372_v24  ;;  %v519_v11 = vmul.f32 %v515_v2, %v1422_v13 }
 0x154   : > { %v442_v8 = vadd.f32 %v438_v4, %v419_v60 }
 0x155   : > { %523 = vrot.lane.b32.xlu1 %v517_v5, %s1198_s25  ;;  %525 = vrot.lane.b32.xlu2 %v518_v7, %s1198_s25  ;;  %v1200_v5 = vmov 19  }
 0x15a   : > { %v437_v9 = vpop.permute.xlu1 %436 }
 0x15b   : > { %v439_v12 = vsel %vm345_vm0, %v435_v63, %v437_v9 }
 0x15c   : > { %v443_v16 = vadd.f32 %v439_v12, %v420_v62 }
 0x15d   : > { %527 = vrot.lane.b32.xlu1 %v519_v11, %s1198_s25  ;;  %537 = vperm.xlu2 %1037, %v1347_v3  }
 0x162   : > { %v458_v18 = vpop.permute.xlu1 %457 }
 0x163   : > { %v461_v19 = vsel %vm345_vm0, %v456_v48, %v458_v18  ;;  %v462_v20 = vsel %vm345_vm0, %v458_v18, %v460_v17 }
 0x164   : > { %v465_v21 = vadd.f32 %v461_v19, %v442_v8  ;;  %v466_v27 = vadd.f32 %v462_v20, %v443_v16  ;;  %v1201_v19 = vmov 20  }
 0x165   : > { %1039 = vset.pattern.permute.xlu2 %v1200_v5 }
 0x16a   : > { %v479_v29 = vpop.permute.xlu1 %478 }
 0x16b   : > { %v484_v30 = vsel %vm345_vm0, %v479_v29, %v481_v28 }
 0x16c   : > { %v488_v31 = vadd.f32 %v484_v30, %v465_v21 }
 0x172   : > { %v483_v36 = vpop.permute.xlu1 %482 }
 0x173   : > { %v485_v37 = vsel %vm345_vm0, %v481_v28, %v483_v36 }
 0x174   : > { %v489_v38 = vadd.f32 %v485_v37, %v466_v27 }
 0x17a   : > { %v504_v44 = vpop.permute.xlu1 %503 }
 0x17b   : > { %v507_v45 = vsel %vm345_vm0, %v502_v56, %v504_v44  ;;  %v508_v14 = vsel %vm345_vm0, %v504_v44, %v506_v39 }
 0x17c   : > { %v511_v48 = vadd.f32 %v507_v45, %v488_v31  ;;  %v512_v15 = vadd.f32 %v508_v14, %v489_v38 }
 0x1af   : > { %v526_v50 = vpop.permute.xlu2 %525 }
 0x1b7   : > { %v538_v51 = vpop.permute.xlu2 %537 }
 0x1b8   : > { %v540_v57 = vmul.f32 %v538_v51, %v1374_v25  ;;  %v541_v59 = vmul.f32 %v538_v51, %v1376_v26  ;;  %v542_v60 = vmul.f32 %v538_v51, %v1435_v22 }
 0x1ba   : > { %550 = vrot.lane.b32.xlu2 %v542_v60, %s1198_s25  ;;  %548 = vrot.lane.b32.xlu1 %v541_v59, %s1198_s25 }
 0x1bb   : > { %546 = vrot.lane.b32.xlu0 %v540_v57, %s1198_s25 }
 0x1c3   : > { %559 = vperm.xlu0 %1038, %v1347_v3  }
 0x1c7   : > { %v524_v56 = vpop.permute.xlu1 %523 }
 0x1c8   : > { %v530_v62 = vsel %vm529_vm1, %v524_v56, %v526_v50 }
 0x1c9   : > { %v534_v63 = vadd.f32 %v530_v62, %v511_v48  ;;  %v1202_v48 = vmov 21  }
 0x1cb   : > { %1040 = vset.pattern.permute.xlu0 %v1201_v19 }
 0x1cf   : > { %v528_v0 = vpop.permute.xlu1 %527 }
 0x1d0   : > { %v531_v2 = vsel %vm529_vm1, %v526_v50, %v528_v0 }
 0x1d1   : > { %v535_v4 = vadd.f32 %v531_v2, %v512_v15  ;;  %v1203_v15 = vmov 22   ;;  %v1207_v2 = vmov 25  }
 0x1d2   : > { %1042 = vset.pattern.permute.xlu1 %v1203_v15 }
 0x214   : > { %v551_v20 = vpop.permute.xlu2 %550 }
 0x22c   : > { %v549_v7 = vpop.permute.xlu1 %548 }
 0x22d   : > { %v547_v8 = vpop.permute.xlu0 %546  ;;  %v553_v38 = vsel %vm529_vm1, %v549_v7, %v551_v20 }
 0x22e   : > { %v552_v9 = vsel %vm529_vm1, %v547_v8, %v549_v7  ;;  %v557_v39 = vadd.f32 %v553_v38, %v535_v4  ;;  %v1208_v4 = vmov 27  }
 0x22f   : > { %v556_v11 = vadd.f32 %v552_v9, %v534_v63  ;;  %v1204_v63 = vmov 23  }
 0x235   : > { %v560_v12 = vpop.permute.xlu0 %559 }
 0x236   : > { %v562_v16 = vmul.f32 %v560_v12, %v1380_v32  ;;  %v563_v17 = vmul.f32 %v560_v12, %v1382_v33  ;;  %v564_v18 = vmul.f32 %v560_v12, %v1447_v42 }
 0x238   : > { %570 = vrot.lane.b32.xlu2 %v563_v17, %s1198_s25  ;;  %568 = vrot.lane.b32.xlu1 %v562_v16, %s1198_s25 }
 0x240   : > { %581 = vperm.xlu2 %1039, %v1347_v3   ;;  %572 = vrot.lane.b32.xlu1 %v564_v18, %s1198_s25 }
 0x248   : > { %1041 = vset.pattern.permute.xlu2 %v1202_v48 }
 0x292   : > { %v571_v21 = vpop.permute.xlu2 %570 }
 0x29a   : > { %v582_v27 = vpop.permute.xlu2 %581 }
 0x29b   : > { %v584_v28 = vmul.f32 %v582_v27, %v1384_v34  ;;  %v585_v29 = vmul.f32 %v582_v27, %v1386_v35  ;;  %v586_v30 = vmul.f32 %v582_v27, %v1453_v43 }
 0x29d   : > { %594 = vrot.lane.b32.xlu2 %v586_v30, %s1198_s25  ;;  %590 = vrot.lane.b32.xlu0 %v584_v28, %s1198_s25 }
 0x29e   : > { %592 = vrot.lane.b32.xlu1 %v585_v29, %s1198_s25 }
 0x2a5   : > { %603 = vperm.xlu0 %1040, %v1347_v3  }
 0x2aa   : > { %v569_v31 = vpop.permute.xlu1 %568 }
 0x2ab   : > { %v574_v36 = vsel %vm529_vm1, %v569_v31, %v571_v21 }
 0x2ac   : > { %v578_v37 = vadd.f32 %v574_v36, %v556_v11 }
 0x2b2   : > { %v573_v44 = vpop.permute.xlu1 %572 }
 0x2b3   : > { %v575_v45 = vsel %vm529_vm1, %v571_v21, %v573_v44 }
 0x2b4   : > { %v579_v14 = vadd.f32 %v575_v45, %v557_v39 }
 0x2f7   : > { %v595_v0 = vpop.permute.xlu2 %594 }
 0x30f   : > { %v591_v49 = vpop.permute.xlu0 %590 }
 0x310   : > { %v593_v50 = vpop.permute.xlu1 %592 }
 0x311   : > { %v596_v51 = vsel %vm529_vm1, %v591_v49, %v593_v50 }
 0x312   : > { %v600_v57 = vadd.f32 %v596_v51, %v578_v37 }
 0x317   : > { %v604_v59 = vpop.permute.xlu0 %603 }
 0x318   : > { %v606_v60 = vmul.f32 %v604_v59, %v1390_v40  ;;  %v607_v56 = vmul.f32 %v604_v59, %v1392_v41  ;;  %v608_v62 = vmul.f32 %v604_v59, %v425_v61  ;;  %v1205_v40 = vmov 26  }
 0x319   : > { %v1206_v41 = vmov 24  }
 0x31a   : > { %614 = vrot.lane.b32.xlu2 %v607_v56, %s1198_s25  ;;  %612 = vrot.lane.b32.xlu1 %v606_v60, %s1198_s25 }
 0x31b   : > { %1044 = vset.pattern.permute.xlu0 %v1206_v41 }
 0x322   : > { %625 = vperm.xlu2 %1041, %v1347_v3   ;;  %616 = vrot.lane.b32.xlu1 %v608_v62, %s1198_s25 }
 0x32a   : > { %647 = vperm.xlu1 %1042, %v1347_v3   ;;  %1043 = vset.pattern.permute.xlu2 %v1204_v63 }
 0x32b   : > { %669 = vperm.xlu2 %1043, %v1347_v3  }
 0x332   : > { %1045 = vset.pattern.permute.xlu1 %v1207_v2 }
 0x333   : > { %1046 = vset.pattern.permute.xlu2 %v1205_v40  ;;  %714 = vperm.xlu1 %1045, %v1347_v3  }
 0x334   : > { %736 = vperm.xlu2 %1046, %v1347_v3  }
 0x33b   : > { %1047 = vset.pattern.permute.xlu1 %v1208_v4 }
 0x33c   : > { %758 = vperm.xlu1 %1047, %v1347_v3  }
 0x374   : > { %v615_v61 = vpop.permute.xlu2 %614 }
 0x37c   : > { %v626_v5 = vpop.permute.xlu2 %625 }
 0x37d   : > { %v628_v7 = vmul.f32 %v626_v5, %v1396_v46  ;;  %v629_v8 = vmul.f32 %v626_v5, %v1398_v47  ;;  %v630_v11 = vmul.f32 %v626_v5, %v448_v58  ;;  %v597_v46 = vsel %vm529_vm1, %v593_v50, %v595_v0 }
 0x37e   : > { %v601_v17 = vadd.f32 %v597_v46, %v579_v14 }
 0x37f   : > { %636 = vrot.lane.b32.xlu2 %v629_v8, %s1198_s25  ;;  %634 = vrot.lane.b32.xlu0 %v628_v7, %s1198_s25 }
 0x385   : > { %v670_v27 = vpop.permute.xlu2 %669 }
 0x386   : > { %v672_v28 = vmul.f32 %v670_v27, %v1406_v54  ;;  %v674_v29 = vmul.f32 %v670_v27, %v494_v1  ;;  %v673_v30 = vmul.f32 %v670_v27, %v1408_v55  ;;  %v781_v27 = vstv %s1609_s28 }
 0x387   : > { %691 = vperm.xlu0 %1044, %v1347_v3  }
 0x38c   : > { %v613_v9 = vpop.permute.xlu1 %612 }
 0x38d   : > { %v618_v12 = vsel %vm529_vm1, %v613_v9, %v615_v61 }
 0x38e   : > { %v622_v16 = vadd.f32 %v618_v12, %v600_v57 }
 0x38f   : > { %638 = vrot.lane.b32.xlu0 %v630_v11, %s1198_s25 }
 0x390   : > { %1048 = vset.pattern.permute.xlu0 %v1208_v4 }
 0x394   : > { %v617_v47 = vpop.permute.xlu1 %616 }
 0x395   : > { %v619_v18 = vsel %vm529_vm1, %v615_v61, %v617_v47 }
 0x396   : > { %v1571_v19 = vadd.f32 %v619_v18, %v601_v17 }
 0x39c   : > { %v648_v20 = vpop.permute.xlu1 %647 }
 0x39d   : > { %v650_v3 = vmul.f32 %v648_v20, %v1402_v52  ;;  %v651_v21 = vmul.f32 %v648_v20, %v1404_v53  ;;  %v652_v58 = vmul.f32 %v648_v20, %v471_v6  ;;  %v737_v52 = vpop.permute.xlu2 %736 }
 0x39f   : > { %660 = vrot.lane.b32.xlu0 %v652_v58, %s1198_s25  ;;  %656 = vrot.lane.b32.xlu1 %v650_v3, %s1198_s25 }
 0x3a0   : > { %658 = vrot.lane.b32.xlu2 %v651_v21, %s1198_s25 }
 0x3a5   : > { %v715_v55 = vpop.permute.xlu1 %714 }
 0x3a6   : > { %v718_v38 = vmul.f32 %v715_v55, %v1376_v26  ;;  %v719_v39 = vmul.f32 %v715_v55, %v1435_v22  ;;  %v717_v44 = vmul.f32 %v715_v55, %v1374_v25 }
 0x3a7   : > { %682 = vrot.lane.b32.xlu0 %v674_v29, %s1198_s25  ;;  %678 = vrot.lane.b32.xlu1 %v672_v28, %s1198_s25 }
 0x3a8   : > { %680 = vrot.lane.b32.xlu2 %v673_v30, %s1198_s25  ;;  %s1095_s25 = scalar_lea.hbm %s1094_s5, 16 }
 0x3a9   : > { %p1096_p3 = scmp.ne.s32.totalorder %s1094_s5, %s1095_s25  ;;  %p1101_p8 = scmp.lt.s32.totalorder %s1099_s8, %s1095_s25 }
 0x3ab   : > { %p1097_p5 = pnand %p1096_p3, %p1303_p9  ;;  %p1102_p10 = por %p1101_p8, %p1100_p7 }
 0x3ad   : > { %p1098_p6 = pneg %p1097_p5 }
 0x3ae   : > { %v759_v45 = vpop.permute.xlu1 %758 }
 0x3af   : > { %v762_v14 = vmul.f32 %v759_v45, %v1386_v35  ;;  %v763_v26 = vmul.f32 %v759_v45, %v1453_v43  ;;  %v761_v22 = vmul.f32 %v759_v45, %v1384_v34  ;;  %p1103_p11 = pnand %p1102_p10, %p1098_p6 }
 0x3d9   : > { %v637_v53 = vpop.permute.xlu2 %636 }
 0x3f1   : > { %v635_v6 = vpop.permute.xlu0 %634 }
 0x3f2   : > { %v640_v31 = vsel %vm529_vm1, %v635_v6, %v637_v53 }
 0x3f3   : > { %v644_v36 = vadd.f32 %v640_v31, %v622_v16 }
 0x3f9   : > { %v692_v37 = vpop.permute.xlu0 %691 }
 0x3fa   : > { %v694_v54 = vmul.f32 %v692_v37, %v1370_v23  ;;  %v695_v10 = vmul.f32 %v692_v37, %v1372_v24  ;;  %v696_v1 = vmul.f32 %v692_v37, %v1422_v13  ;;  %v740_v23 = vmul.f32 %v737_v52, %v1382_v33  ;;  %v659_v48 = vpop.permute.xlu2 %658 }
 0x3fb   : > { %v741_v24 = vmul.f32 %v737_v52, %v1447_v42  ;;  %v739_v13 = vmul.f32 %v737_v52, %v1380_v32 }
 0x3fc   : > { %704 = vrot.lane.b32.xlu0 %v696_v1, %s1209_s29  ;;  %702 = vrot.lane.b32.xlu2 %v695_v10, %s1209_s29 }
 0x3fd   : > { %700 = vrot.lane.b32.xlu1 %v694_v54, %s1209_s29 }
 0x401   : > { %v639_v25 = vpop.permute.xlu0 %638 }
 0x402   : > { %v681_v42 = vpop.permute.xlu2 %680  ;;  %v641_v34 = vsel %vm529_vm1, %v637_v53, %v639_v25 }
 0x403   : > { %v645_v56 = vadd.f32 %v641_v34, %v1571_v19 }
 0x404   : > { %727 = vrot.lane.b32.xlu0 %v719_v39, %s1209_s29  ;;  %725 = vrot.lane.b32.xlu2 %v718_v38, %s1209_s29 }
 0x405   : > { %723 = vrot.lane.b32.xlu1 %v717_v44, %s1209_s29 }
 0x40c   : > { %749 = vrot.lane.b32.xlu0 %v741_v24, %s1209_s29  ;;  %747 = vrot.lane.b32.xlu2 %v740_v23, %s1209_s29 }
 0x40d   : > { %745 = vrot.lane.b32.xlu1 %v739_v13, %s1209_s29 }
 0x411   : > { %v661_v33 = vpop.permute.xlu0 %660  ;;  %v657_v15 = vpop.permute.xlu1 %656 }
 0x412   : > { %v663_v60 = vsel %vm529_vm1, %v659_v48, %v661_v33  ;;  %v662_v62 = vsel %vm529_vm1, %v657_v15, %v659_v48 }
 0x413   : > { %v667_v41 = vadd.f32 %v663_v60, %v645_v56  ;;  %v666_v61 = vadd.f32 %v662_v62, %v644_v36 }
 0x414   : > { %771 = vrot.lane.b32.xlu0 %v763_v26, %s1209_s29  ;;  %769 = vrot.lane.b32.xlu2 %v762_v14, %s1209_s29 }
 0x415   : > { %767 = vrot.lane.b32.xlu1 %v761_v22, %s1209_s29 }
 0x419   : > { %v683_v32 = vpop.permute.xlu0 %682  ;;  %v679_v49 = vpop.permute.xlu1 %678 }
 0x41a   : > { %v685_v40 = vsel %vm529_vm1, %v681_v42, %v683_v32  ;;  %v684_v0 = vsel %vm529_vm1, %v679_v49, %v681_v42 }
 0x41b   : > { %v689_v7 = vadd.f32 %v685_v40, %v667_v41  ;;  %v688_v9 = vadd.f32 %v684_v0, %v666_v61 }
 0x456   : > { %v703_v50 = vpop.permute.xlu2 %702 }
 0x45e   : > { %v726_v35 = vpop.permute.xlu2 %725 }
 0x466   : > { %v748_v63 = vpop.permute.xlu2 %747 }
 0x46e   : > { %v705_v51 = vpop.permute.xlu0 %704  ;;  %v770_v20 = vpop.permute.xlu2 %769 }
 0x46f   : > { %v701_v57 = vpop.permute.xlu1 %700  ;;  %v708_v4 = vsel %vm706_vm2, %v703_v50, %v705_v51 }
 0x470   : > { %v707_v8 = vsel %vm706_vm2, %v701_v57, %v703_v50  ;;  %v712_v12 = vadd.f32 %v708_v4, %v689_v7 }
 0x471   : > { %v711_v46 = vadd.f32 %v707_v8, %v688_v9 }
 0x476   : > { %v728_v59 = vpop.permute.xlu0 %727 }
 0x477   : > { %v724_v43 = vpop.permute.xlu1 %723  ;;  %v730_v11 = vsel %vm706_vm2, %v726_v35, %v728_v59 }
 0x478   : > { %v729_v16 = vsel %vm706_vm2, %v724_v43, %v726_v35  ;;  %v734_v47 = vadd.f32 %v730_v11, %v712_v12 }
 0x479   : > { %v733_v19 = vadd.f32 %v729_v16, %v711_v46 }
 0x47e   : > { %v750_v2 = vpop.permute.xlu0 %749 }
 0x47f   : > { %v746_v5 = vpop.permute.xlu1 %745  ;;  %v752_v17 = vsel %vm706_vm2, %v748_v63, %v750_v2 }
 0x480   : > { %v751_v18 = vsel %vm706_vm2, %v746_v5, %v748_v63  ;;  %v756_v3 = vadd.f32 %v752_v17, %v734_v47 }
 0x481   : > { %v755_v58 = vadd.f32 %v751_v18, %v733_v19 }
 0x486   : > { %v772_v21 = vpop.permute.xlu0 %771 }
 0x487   : > { %v774_v28 = vsel %vm706_vm2, %v770_v20, %v772_v21  ;;  %v768_v29 = vpop.permute.xlu1 %767 }
 0x488   : > { %v778_v30 = vadd.f32 %v774_v28, %v756_v3  ;;  %v773_v52 = vsel %vm706_vm2, %v768_v29, %v770_v20 }
 0x489   : > { %v777_v53 = vadd.f32 %v773_v52, %v755_v58 }
 0x48a   : > { %vm780_vm3 = vcmp.gt.f32.partialorder %v778_v30, 0.0  ;;  %v783_v6 = vmul.f32 %v781_v27, %v778_v30 }
 0x48b   : > { %vm779_vm4 = vcmp.gt.f32.partialorder %v777_v53, 0.0  ;;  %v782_v31 = vmul.f32 %v781_v27, %v777_v53 }
 0x48c   : > { %v785_v36 = vsel %vm780_vm3, %v778_v30, %v783_v6 }
 0x48d   : > { %v784_v37 = vsel %vm779_vm4, %v777_v53, %v782_v31  ;;  %787 = vst [vmem:[%s234_s27 + $0x8] sm:$0xff] %v785_v36 }
 0x48e   : > { %786 = vst [vmem:[%s234_s27] sm:$0xff] %v784_v37 }
 0x48f   : > { %1106 = shalt.err (!%p1103_p11)
}
 0x490   : > { %913 = dma.vmem_to_hbm [thread:$0]  (%p1303_p9), %s805_s10, 256, %s807_s14, %s789_s3  }
 0x491 PF: > { %p924_p13 = scmp.ge.s32.totalorder %s1177_s24, 2  ;;  %s818_s12 = sand.u32 1, %s1149_s17  }
 0x492   : > { %s819_s20 = scalar_lea.sflag [#allocation5], %s818_s12 }
 0x493   : > { %p920_p0 = pnand %p924_p13, %p1309_p12 }
 0x495   : > { %p921_p1 = pneg %p920_p0 }
 0x497   : > { %1144 = dma.done.wait (%p921_p1), %s819_s20, 256  }
 0x498   : > { %1146 = vsyncadd (%p921_p1), %s819_s20, 4294967040  ;;  %s21_s24 = sadd.s32 1, %s1177_s24   ;;  %s1674_s6 = sld [smem:[#allocation9_spill]] }
 0x499   : > { %p18_p2 = scmp.ge.s32.totalorder %s21_s24, 6   ;;  %s1675_s17 = smov %s1153_s18 }
 0x49a   : > { %s1676_s18 = smov %s1157_s19  ;;  %s1677_s19 = smov %s1316_s11 }
 0x49b   : > { %s1678_s20 = smov %s1169_s22  ;;  %s1679_s21 = smov %s1173_s23 }
 0x49c   : > { %s1680_s22 = smov %s1683_s26  ;;  %20 = sbr.rel (!%p18_p2) target bundleno = 9 (0x9), region = 81 }
 0x49e   : > { %s1681_s23 = smov %s1674_s6 }
 0x4a1   :  { %825 = vsyncpa [#allocation4], 1 }
 0x4a2   :  { %827 = vsyncpa [#allocation4 + $0x1], 1 }
 0x4a3   :  { %828 = vsyncpa [#allocation5], 1 }
 0x4a4   :  { %830 = vsyncpa [#allocation5 + $0x1], 1 }

</bundles_post_ra>
